<compile_context>
chip_gen: v7x
topology: tpu7x:2x2x1
jax: 0.10.0
libtpu: 0.0.40
codegen_flags: <defaults>
</compile_context>

<pallas_src>
import functools

import jax
import jax.numpy as jnp
from jax.experimental import pallas as pl
from jax.experimental.pallas import tpu as pltpu

N_MID = 128   # hidden width of DuelingDQN_2_5
LANE = 128    # TPU lane width; output slab padded to a multiple of this


def _round_up(x, m):
    return (x + m - 1) // m * m


def _dense(h, w_ref, b_ref, *, relu):
    """y = h @ W + b on the MXU with f32 accumulation; optional ReLU on the VPU.

    If the weight is stored bf16, only the MXU operands are cast; the
    accumulation, bias add and ReLU stay f32.
    """
    w = w_ref[...]
    lhs = h if h.dtype == w.dtype else h.astype(w.dtype)
    y = jnp.dot(lhs, w, preferred_element_type=jnp.float32) + b_ref[...]
    return jnp.maximum(y, 0.0) if relu else y


def _dueling_dqn_kernel(x_ref,
                        w1_ref, b1_ref,
                        w2_ref, b2_ref,
                        w21_ref, b21_ref,
                        w22_ref, b22_ref,
                        wadv_ref, badv_ref,
                        wv_ref, bv_ref,
                        out_ref, *, n_out):
    x = x_ref[...]

    h1 = _dense(x, w1_ref, b1_ref, relu=True)
    h2 = _dense(h1, w2_ref, b2_ref, relu=True)
    h2_1 = _dense(h2, w21_ref, b21_ref, relu=True)
    h2_2 = _dense(h2_1, w22_ref, b22_ref, relu=True)

    # Advantage head: lane-dense (block_b, n_pad) slab.  Padded columns of
    # wadv/badv are zero, so they contribute nothing to the row sum below.
    adv = _dense(h2_2, wadv_ref, badv_ref, relu=False)

    # Value head: a (128 -> 1) matmul wastes an MXU pass for one useful lane;
    # do it on the VPU (mul) + XLU (lane reduction) instead, overlapping with
    # the adv matmul in different VLIW slots.
    val = jnp.sum(h2 * wv_ref[...], axis=1, keepdims=True) + bv_ref[...]

    # Mean over the *real* n_out advantage columns (padded columns are zero).
    adv_mean = jnp.sum(adv, axis=1, keepdims=True) * (1.0 / n_out)

    # q = val + adv - mean(adv);  output = tanh(q)  (EUP, free slot)
    out_ref[...] = jnp.tanh(val + adv - adv_mean)


def dueling_dqn_forward(x, params, *, block_b=None):
    """Fused Pallas forward of DuelingDQN_2_5.

    x: (B, n_in) float32.  params: weights stored (in_features, out_features),
    biases stored (1, out_features).  Hidden weights may be bf16.
    """
    B, n_in = x.shape
    n_mid = params["w1"].shape[1]
    n_out = params["wadv"].shape[1]
    n_pad = _round_up(max(n_out, 1), LANE)

    # ---- batch tiling -------------------------------------------------------
    if block_b is None:
        # Modest default tile: MXU-friendly and comfortably inside v7x's
        # 64 MiB VMEM even with double buffering.
        block_b = min(256, _round_up(B, 8))
    block_b = _round_up(block_b, 8)
    b_pad = _round_up(B, block_b)
    if b_pad != B:
        x = jnp.pad(x, ((0, b_pad - B), (0, 0)))
    grid = (b_pad // block_b,)

    # ---- lane-dense advantage head (pad n_out -> multiple of 128 lanes) -----
    wadv, badv = params["wadv"], params["badv"]
    wadv_p = jnp.zeros((n_mid, n_pad), wadv.dtype).at[:, :n_out].set(wadv)
    badv_p = jnp.zeros((1, n_pad), jnp.float32).at[:, :n_out].set(
        badv.astype(jnp.float32))

    # Value head runs on the VPU -> keep it f32 (v5e VPU has no bf16).
    wv_row = params["wv"].reshape(1, n_mid).astype(jnp.float32)
    bv = params["bv"].reshape(1, 1).astype(jnp.float32)

    args = (x,
            params["w1"], params["b1"].astype(jnp.float32),
            params["w2"], params["b2"].astype(jnp.float32),
            params["w21"], params["b21"].astype(jnp.float32),
            params["w22"], params["b22"].astype(jnp.float32),
            wadv_p, badv_p,
            wv_row, bv)

    # x / out are tiled over the batch grid; weights and biases are pinned
    # VMEM-resident (constant index_map -> no re-DMA across grid steps).
    def resident(a):
        return pl.BlockSpec(a.shape, lambda i: (0,) * a.ndim)

    in_specs = [pl.BlockSpec((block_b, n_in), lambda i: (i, 0))] + \
               [resident(a) for a in args[1:]]
    out_spec = pl.BlockSpec((block_b, n_pad), lambda i: (i, 0))

    flops = 2 * b_pad * (n_in * n_mid + 3 * n_mid * n_mid + n_mid * n_pad + n_mid)
    bytes_accessed = (x.size * x.dtype.itemsize
                      + sum(a.size * a.dtype.itemsize for a in args[1:])
                      + b_pad * n_pad * 4)

    out = pl.pallas_call(
        functools.partial(_dueling_dqn_kernel, n_out=n_out),
        grid=grid,
        in_specs=in_specs,
        out_specs=out_spec,
        out_shape=jax.ShapeDtypeStruct((b_pad, n_pad), jnp.float32),
        compiler_params=pltpu.CompilerParams(
            dimension_semantics=("parallel",)),   # v7x: split batch over 2 TCs
        cost_estimate=pl.CostEstimate(
            flops=flops,
            transcendentals=b_pad * n_pad,
            bytes_accessed=bytes_accessed),
    )(*args)

    return out[:B, :n_out]


def init_params(key, n_in, n_out, n_mid=N_MID):
    """Deterministic init mimicking PyTorch nn.Linear: U(-1/sqrt(fan_in), +1/sqrt(fan_in))."""
    def linear(k, fan_in, fan_out):
        kw, kb = jax.random.split(k)
        bound = 1.0 / jnp.sqrt(fan_in)
        w = jax.random.uniform(kw, (fan_in, fan_out), jnp.float32, -bound, bound)
        b = jax.random.uniform(kb, (1, fan_out), jnp.float32, -bound, bound)
        return w, b

    keys = jax.random.split(key, 6)
    w1, b1 = linear(keys[0], n_in, n_mid)
    w2, b2 = linear(keys[1], n_mid, n_mid)
    w21, b21 = linear(keys[2], n_mid, n_mid)
    w22, b22 = linear(keys[3], n_mid, n_mid)
    wadv, badv = linear(keys[4], n_mid, n_out)
    wv, bv = linear(keys[5], n_mid, 1)
    return dict(w1=w1, b1=b1, w2=w2, b2=b2, w21=w21, b21=b21, w22=w22, b22=b22,
                wadv=wadv, badv=badv, wv=wv, bv=bv)


def cast_hidden_weights(params, dtype):
    """Store MXU weights in a narrower dtype (bf16) to halve weight DMA bytes."""
    out = dict(params)
    for k in ("w1", "w2", "w21", "w22", "wadv"):
        out[k] = params[k].astype(dtype)
    return out


def reference_forward(x, p):
    """Pure-JAX reference matching the PyTorch forward semantics (f32)."""
    h1 = jax.nn.relu(x @ p["w1"] + p["b1"])
    h2 = jax.nn.relu(h1 @ p["w2"] + p["b2"])
    h2_1 = jax.nn.relu(h2 @ p["w21"] + p["b21"])
    h2_2 = jax.nn.relu(h2_1 @ p["w22"] + p["b22"])
    adv = h2_2 @ p["wadv"] + p["badv"]
    val = h2 @ p["wv"] + p["bv"]
    q = val + adv - jnp.mean(adv, axis=1, keepdims=True)
    return jnp.tanh(q)


if __name__ == "__main__":
    key = jax.random.PRNGKey(0)
    k_x, k_p, k_x2 = jax.random.split(key, 3)

    B, n_in, n_out = 8, 32, 8
    x = jax.random.normal(k_x, (B, n_in), jnp.float32)
    params = init_params(k_p, n_in, n_out)

    # 1) f32 weights, single-tile grid.
    out = jax.block_until_ready(dueling_dqn_forward(x, params))
    ref = reference_forward(x, params)
    assert out.shape == (B, n_out)
    assert jnp.allclose(out, ref, atol=1e-5, rtol=1e-5), "f32 mismatch vs. reference"

    # 2) Multi-tile batch grid with padding: B=20, block_b=8 -> grid=(3,).
    x2 = jax.random.normal(k_x2, (20, n_in), jnp.float32)
    out2 = jax.block_until_ready(dueling_dqn_forward(x2, params, block_b=8))
    ref2 = reference_forward(x2, params)
    assert out2.shape == (20, n_out)
    assert jnp.allclose(out2, ref2, atol=1e-5, rtol=1e-5), "tiled mismatch vs. reference"

    # 3) bf16 MXU weights (halved weight DMA; f32 accumulation + f32 elementwise).
    params_bf16 = cast_hidden_weights(params, jnp.bfloat16)
    out3 = jax.block_until_ready(dueling_dqn_forward(x, params_bf16))
    assert out3.shape == (B, n_out)
    assert jnp.allclose(out3, ref, atol=5e-2, rtol=0.0), "bf16 mismatch vs. reference"

    print("KERNEL_OK")
</pallas_src>

<mosaic_0001>
module attributes {stable_mosaic.version = 11 : i64} {
  func.func @_dueling_dqn_kernel(%arg0: i32, %arg1: memref<8x32xf32, #tpu.memory_space<vmem>>, %arg2: memref<32x128xf32, #tpu.memory_space<vmem>>, %arg3: memref<1x128xf32, #tpu.memory_space<vmem>>, %arg4: memref<128x128xf32, #tpu.memory_space<vmem>>, %arg5: memref<1x128xf32, #tpu.memory_space<vmem>>, %arg6: memref<128x128xf32, #tpu.memory_space<vmem>>, %arg7: memref<1x128xf32, #tpu.memory_space<vmem>>, %arg8: memref<128x128xf32, #tpu.memory_space<vmem>>, %arg9: memref<1x128xf32, #tpu.memory_space<vmem>>, %arg10: memref<128x128xf32, #tpu.memory_space<vmem>>, %arg11: memref<1x128xf32, #tpu.memory_space<vmem>>, %arg12: memref<1x128xf32, #tpu.memory_space<vmem>>, %arg13: memref<1x1xf32, #tpu.memory_space<vmem>>, %arg14: memref<8x128xf32, #tpu.memory_space<vmem>>) attributes {dimension_semantics = [#tpu.dimension_semantics<parallel>], iteration_bounds = array<i64: 1>, scalar_prefetch = 0 : i64, scratch_operands = 0 : i64, tpu.core_type = #tpu.core_type<tc>, window_params = [{transform_indices = @transform_0, window_bounds = array<i64: 8, 32>}, {pipeline_mode = #tpu.pipeline_mode<synchronous>, transform_indices = @transform_1, window_bounds = array<i64: 32, 128>}, {pipeline_mode = #tpu.pipeline_mode<synchronous>, transform_indices = @transform_2, window_bounds = array<i64: 1, 128>}, {pipeline_mode = #tpu.pipeline_mode<synchronous>, transform_indices = @transform_3, window_bounds = array<i64: 128, 128>}, {pipeline_mode = #tpu.pipeline_mode<synchronous>, transform_indices = @transform_4, window_bounds = array<i64: 1, 128>}, {pipeline_mode = #tpu.pipeline_mode<synchronous>, transform_indices = @transform_5, window_bounds = array<i64: 128, 128>}, {pipeline_mode = #tpu.pipeline_mode<synchronous>, transform_indices = @transform_6, window_bounds = array<i64: 1, 128>}, {pipeline_mode = #tpu.pipeline_mode<synchronous>, transform_indices = @transform_7, window_bounds = array<i64: 128, 128>}, {pipeline_mode = #tpu.pipeline_mode<synchronous>, transform_indices = @transform_8, window_bounds = array<i64: 1, 128>}, {pipeline_mode = #tpu.pipeline_mode<synchronous>, transform_indices = @transform_9, window_bounds = array<i64: 128, 128>}, {pipeline_mode = #tpu.pipeline_mode<synchronous>, transform_indices = @transform_10, window_bounds = array<i64: 1, 128>}, {pipeline_mode = #tpu.pipeline_mode<synchronous>, transform_indices = @transform_11, window_bounds = array<i64: 1, 128>}, {pipeline_mode = #tpu.pipeline_mode<synchronous>, transform_indices = @transform_12, window_bounds = array<i64: 1, 1>}, {transform_indices = @transform_13, window_bounds = array<i64: 8, 128>}]} {
    %c0 = arith.constant 0 : index
    %c0_0 = arith.constant 0 : index
    %0 = vector.load %arg1[%c0, %c0_0] : memref<8x32xf32, #tpu.memory_space<vmem>>, vector<8x32xf32>
    %c0_1 = arith.constant 0 : index
    %c0_2 = arith.constant 0 : index
    %1 = vector.load %arg2[%c0_1, %c0_2] : memref<32x128xf32, #tpu.memory_space<vmem>>, vector<32x128xf32>
    %cst = arith.constant dense<0.000000e+00> : vector<8x128xf32>
    %2 = tpu.matmul %0, %1, %cst {dimension_numbers = #tpu.dot_dimension_numbers<[1], [0], [0], [1], [0, 0, 1, 1], [], []>} : vector<8x32xf32>, vector<32x128xf32>, vector<8x128xf32> -> vector<8x128xf32>
    %c0_3 = arith.constant 0 : index
    %c0_4 = arith.constant 0 : index
    %3 = vector.load %arg3[%c0_3, %c0_4] : memref<1x128xf32, #tpu.memory_space<vmem>>, vector<1x128xf32>
    %4 = vector.broadcast %3 : vector<1x128xf32> to vector<8x128xf32>
    %5 = arith.addf %2, %4 : vector<8x128xf32>
    %cst_5 = arith.constant 0.000000e+00 : f32
    %6 = vector.broadcast %cst_5 : f32 to vector<8x128xf32>
    %7 = arith.maximumf %5, %6 : vector<8x128xf32>
    %c0_6 = arith.constant 0 : index
    %c0_7 = arith.constant 0 : index
    %8 = vector.load %arg4[%c0_6, %c0_7] : memref<128x128xf32, #tpu.memory_space<vmem>>, vector<128x128xf32>
    %cst_8 = arith.constant dense<0.000000e+00> : vector<8x128xf32>
    %9 = tpu.matmul %7, %8, %cst_8 {dimension_numbers = #tpu.dot_dimension_numbers<[1], [0], [0], [1], [0, 0, 1, 1], [], []>} : vector<8x128xf32>, vector<128x128xf32>, vector<8x128xf32> -> vector<8x128xf32>
    %c0_9 = arith.constant 0 : index
    %c0_10 = arith.constant 0 : index
    %10 = vector.load %arg5[%c0_9, %c0_10] : memref<1x128xf32, #tpu.memory_space<vmem>>, vector<1x128xf32>
    %11 = vector.broadcast %10 : vector<1x128xf32> to vector<8x128xf32>
    %12 = arith.addf %9, %11 : vector<8x128xf32>
    %cst_11 = arith.constant 0.000000e+00 : f32
    %13 = vector.broadcast %cst_11 : f32 to vector<8x128xf32>
    %14 = arith.maximumf %12, %13 : vector<8x128xf32>
    %c0_12 = arith.constant 0 : index
    %c0_13 = arith.constant 0 : index
    %15 = vector.load %arg6[%c0_12, %c0_13] : memref<128x128xf32, #tpu.memory_space<vmem>>, vector<128x128xf32>
    %cst_14 = arith.constant dense<0.000000e+00> : vector<8x128xf32>
    %16 = tpu.matmul %14, %15, %cst_14 {dimension_numbers = #tpu.dot_dimension_numbers<[1], [0], [0], [1], [0, 0, 1, 1], [], []>} : vector<8x128xf32>, vector<128x128xf32>, vector<8x128xf32> -> vector<8x128xf32>
    %c0_15 = arith.constant 0 : index
    %c0_16 = arith.constant 0 : index
    %17 = vector.load %arg7[%c0_15, %c0_16] : memref<1x128xf32, #tpu.memory_space<vmem>>, vector<1x128xf32>
    %18 = vector.broadcast %17 : vector<1x128xf32> to vector<8x128xf32>
    %19 = arith.addf %16, %18 : vector<8x128xf32>
    %cst_17 = arith.constant 0.000000e+00 : f32
    %20 = vector.broadcast %cst_17 : f32 to vector<8x128xf32>
    %21 = arith.maximumf %19, %20 : vector<8x128xf32>
    %c0_18 = arith.constant 0 : index
    %c0_19 = arith.constant 0 : index
    %22 = vector.load %arg8[%c0_18, %c0_19] : memref<128x128xf32, #tpu.memory_space<vmem>>, vector<128x128xf32>
    %cst_20 = arith.constant dense<0.000000e+00> : vector<8x128xf32>
    %23 = tpu.matmul %21, %22, %cst_20 {dimension_numbers = #tpu.dot_dimension_numbers<[1], [0], [0], [1], [0, 0, 1, 1], [], []>} : vector<8x128xf32>, vector<128x128xf32>, vector<8x128xf32> -> vector<8x128xf32>
    %c0_21 = arith.constant 0 : index
    %c0_22 = arith.constant 0 : index
    %24 = vector.load %arg9[%c0_21, %c0_22] : memref<1x128xf32, #tpu.memory_space<vmem>>, vector<1x128xf32>
    %25 = vector.broadcast %24 : vector<1x128xf32> to vector<8x128xf32>
    %26 = arith.addf %23, %25 : vector<8x128xf32>
    %cst_23 = arith.constant 0.000000e+00 : f32
    %27 = vector.broadcast %cst_23 : f32 to vector<8x128xf32>
    %28 = arith.maximumf %26, %27 : vector<8x128xf32>
    %c0_24 = arith.constant 0 : index
    %c0_25 = arith.constant 0 : index
    %29 = vector.load %arg10[%c0_24, %c0_25] : memref<128x128xf32, #tpu.memory_space<vmem>>, vector<128x128xf32>
    %cst_26 = arith.constant dense<0.000000e+00> : vector<8x128xf32>
    %30 = tpu.matmul %28, %29, %cst_26 {dimension_numbers = #tpu.dot_dimension_numbers<[1], [0], [0], [1], [0, 0, 1, 1], [], []>} : vector<8x128xf32>, vector<128x128xf32>, vector<8x128xf32> -> vector<8x128xf32>
    %c0_27 = arith.constant 0 : index
    %c0_28 = arith.constant 0 : index
    %31 = vector.load %arg11[%c0_27, %c0_28] : memref<1x128xf32, #tpu.memory_space<vmem>>, vector<1x128xf32>
    %32 = vector.broadcast %31 : vector<1x128xf32> to vector<8x128xf32>
    %33 = arith.addf %30, %32 : vector<8x128xf32>
    %c0_29 = arith.constant 0 : index
    %c0_30 = arith.constant 0 : index
    %34 = vector.load %arg12[%c0_29, %c0_30] : memref<1x128xf32, #tpu.memory_space<vmem>>, vector<1x128xf32>
    %35 = vector.broadcast %34 : vector<1x128xf32> to vector<8x128xf32>
    %36 = arith.mulf %14, %35 : vector<8x128xf32>
    %cst_31 = arith.constant dense<0.000000e+00> : vector<8xf32>
    %37 = vector.multi_reduction <add>, %36, %cst_31 [1] : vector<8x128xf32> to vector<8xf32>
    %38 = vector.shape_cast %37 : vector<8xf32> to vector<8x1xf32>
    %c0_32 = arith.constant 0 : index
    %c0_33 = arith.constant 0 : index
    %39 = vector.load %arg13[%c0_32, %c0_33] : memref<1x1xf32, #tpu.memory_space<vmem>>, vector<1x1xf32>
    %40 = vector.broadcast %39 : vector<1x1xf32> to vector<8x1xf32>
    %41 = arith.addf %38, %40 : vector<8x1xf32>
    %cst_34 = arith.constant dense<0.000000e+00> : vector<8xf32>
    %42 = vector.multi_reduction <add>, %33, %cst_34 [1] : vector<8x128xf32> to vector<8xf32>
    %43 = vector.shape_cast %42 : vector<8xf32> to vector<8x1xf32>
    %cst_35 = arith.constant 1.250000e-01 : f32
    %44 = vector.broadcast %cst_35 : f32 to vector<8x1xf32>
    %45 = arith.mulf %43, %44 : vector<8x1xf32>
    %46 = vector.broadcast %41 : vector<8x1xf32> to vector<8x128xf32>
    %47 = arith.addf %46, %33 : vector<8x128xf32>
    %48 = vector.broadcast %45 : vector<8x1xf32> to vector<8x128xf32>
    %49 = arith.subf %47, %48 : vector<8x128xf32>
    %50 = math.tanh %49 : vector<8x128xf32>
    %c0_36 = arith.constant 0 : index
    %c0_37 = arith.constant 0 : index
    %51 = vector.load %arg14[%c0_36, %c0_37] : memref<8x128xf32, #tpu.memory_space<vmem>>, vector<8x128xf32>
    tpu.vector_store %arg14[%c0_36, %c0_37], %50 {strides = array<i32>} : memref<8x128xf32, #tpu.memory_space<vmem>>, vector<8x128xf32>,
    return
  }
  func.func @transform_0(%arg0: i32) -> (i32, i32) {
    %c0_i32 = arith.constant 0 : i32
    %c0_i32_0 = arith.constant 0 : i32
    return %arg0, %c0_i32 : i32, i32
  }
  func.func @transform_1(%arg0: i32) -> (i32, i32) {
    %c0_i32 = arith.constant 0 : i32
    %c0_i32_0 = arith.constant 0 : i32
    %c0_i32_1 = arith.constant 0 : i32
    return %c0_i32, %c0_i32_0 : i32, i32
  }
  func.func @transform_2(%arg0: i32) -> (i32, i32) {
    %c0_i32 = arith.constant 0 : i32
    %c0_i32_0 = arith.constant 0 : i32
    %c0_i32_1 = arith.constant 0 : i32
    return %c0_i32, %c0_i32_0 : i32, i32
  }
  func.func @transform_3(%arg0: i32) -> (i32, i32) {
    %c0_i32 = arith.constant 0 : i32
    %c0_i32_0 = arith.constant 0 : i32
    %c0_i32_1 = arith.constant 0 : i32
    return %c0_i32, %c0_i32_0 : i32, i32
  }
  func.func @transform_4(%arg0: i32) -> (i32, i32) {
    %c0_i32 = arith.constant 0 : i32
    %c0_i32_0 = arith.constant 0 : i32
    %c0_i32_1 = arith.constant 0 : i32
    return %c0_i32, %c0_i32_0 : i32, i32
  }
  func.func @transform_5(%arg0: i32) -> (i32, i32) {
    %c0_i32 = arith.constant 0 : i32
    %c0_i32_0 = arith.constant 0 : i32
    %c0_i32_1 = arith.constant 0 : i32
    return %c0_i32, %c0_i32_0 : i32, i32
  }
  func.func @transform_6(%arg0: i32) -> (i32, i32) {
    %c0_i32 = arith.constant 0 : i32
    %c0_i32_0 = arith.constant 0 : i32
    %c0_i32_1 = arith.constant 0 : i32
    return %c0_i32, %c0_i32_0 : i32, i32
  }
  func.func @transform_7(%arg0: i32) -> (i32, i32) {
    %c0_i32 = arith.constant 0 : i32
    %c0_i32_0 = arith.constant 0 : i32
    %c0_i32_1 = arith.constant 0 : i32
    return %c0_i32, %c0_i32_0 : i32, i32
  }
  func.func @transform_8(%arg0: i32) -> (i32, i32) {
    %c0_i32 = arith.constant 0 : i32
    %c0_i32_0 = arith.constant 0 : i32
    %c0_i32_1 = arith.constant 0 : i32
    return %c0_i32, %c0_i32_0 : i32, i32
  }
  func.func @transform_9(%arg0: i32) -> (i32, i32) {
    %c0_i32 = arith.constant 0 : i32
    %c0_i32_0 = arith.constant 0 : i32
    %c0_i32_1 = arith.constant 0 : i32
    return %c0_i32, %c0_i32_0 : i32, i32
  }
  func.func @transform_10(%arg0: i32) -> (i32, i32) {
    %c0_i32 = arith.constant 0 : i32
    %c0_i32_0 = arith.constant 0 : i32
    %c0_i32_1 = arith.constant 0 : i32
    return %c0_i32, %c0_i32_0 : i32, i32
  }
  func.func @transform_11(%arg0: i32) -> (i32, i32) {
    %c0_i32 = arith.constant 0 : i32
    %c0_i32_0 = arith.constant 0 : i32
    %c0_i32_1 = arith.constant 0 : i32
    return %c0_i32, %c0_i32_0 : i32, i32
  }
  func.func @transform_12(%arg0: i32) -> (i32, i32) {
    %c0_i32 = arith.constant 0 : i32
    %c0_i32_0 = arith.constant 0 : i32
    %c0_i32_1 = arith.constant 0 : i32
    return %c0_i32, %c0_i32_0 : i32, i32
  }
  func.func @transform_13(%arg0: i32) -> (i32, i32) {
    %c0_i32 = arith.constant 0 : i32
    %c0_i32_0 = arith.constant 0 : i32
    return %arg0, %c0_i32 : i32, i32
  }
}

</mosaic_0001>

<bundles_post_ra>
// kernel: tpu_custom_call.1
= control target key start
LH: loop header
LB: loop body
LE: loop exit
PB: predicated region body
PF: predicated region fallthrough
CT: control target
= control target key end

     0   :  { %s1399_s0 = inlined_call_operand.hbm [shape: f32[8,32], index: 0, kind: input, shape index: {}]   ;;  %s1400_s1 = inlined_call_operand.hbm [shape: f32[32,128], index: 1, kind: input, shape index: {}]   ;;  %s1401_s2 = inlined_call_operand.vmem [shape: f32[1,128], index: 2, kind: input, shape index: {}]   ;;  %s1402_s3 = inlined_call_operand.hbm [shape: f32[128,128], index: 3, kind: input, shape index: {}]   ;;  %s1403_s4 = inlined_call_operand.vmem [shape: f32[1,128], index: 4, kind: input, shape index: {}]   ;;  %s1404_s5 = inlined_call_operand.hbm [shape: f32[128,128], index: 5, kind: input, shape index: {}]   ;;  %s1405_s6 = inlined_call_operand.vmem [shape: f32[1,128], index: 6, kind: input, shape index: {}]   ;;  %s1406_s7 = inlined_call_operand.hbm [shape: f32[128,128], index: 7, kind: input, shape index: {}]   ;;  %s1407_s8 = inlined_call_operand.vmem [shape: f32[1,128], index: 8, kind: input, shape index: {}]   ;;  %s1408_s9 = inlined_call_operand.hbm [shape: f32[128,128], index: 9, kind: input, shape index: {}]   ;;  %s1409_s10 = inlined_call_operand.vmem [shape: f32[1,128], index: 10, kind: input, shape index: {}]   ;;  %s1410_s11 = inlined_call_operand.vmem [shape: f32[1,128], index: 11, kind: input, shape index: {}]   ;;  %s1411_s12 = inlined_call_operand.<no memory space> [shape: f32[1,1], index: 12, kind: input, shape index: {}]   ;;  %s1412_s13 = inlined_call_operand.hbm [shape: f32[8,128], index: 13, kind: output, shape index: {}]  }
   0x1   :  { %v18_v0 = vstv %s1411_s12 }
   0x2   :  { %19 = vst [vmem:[#allocation2] sm:$0x1] %v18_v0 }
   0x3   :  { %20 = vsyncpa [#allocation4], 0 }
   0x4   :  { %21 = vsyncpa [#allocation7], 0 }
   0x5   :  { %22 = vsyncpa [#allocation10], 0 }
   0x6   :  { %23 = vsyncpa [#allocation13], 0 }
   0x7   :  { %24 = vsyncpa [#allocation5], 0  ;;  %s1152_s27 = smov [#allocation6]   ;;  %s988_s14 = scalar_lea.hbm %s1400_s1, 512 }
   0x8   :  { %s40_s28 = sshll.u32 %s1152_s27, 4  ;;  %p989_p0 = scmp.ne.s32.totalorder %s1400_s1, %s988_s14  ;;  %s41_s28 = int_to_ptr.vmem [resolvable:$true] %s40_s28 }
   0x9   :  { %p992_p1 = scmp.lt.u32.totalorder %s988_s14, %s1400_s1 }
   0xb   :  { %p994_p2 = pnand %p992_p1, %p989_p0 }
   0xd   :  { %997 = shalt.err (!%p994_p2)
}
   0xe   :  { %s998_s12 = scalar_lea.vmem %s41_s28, 512  ;;  %p1003_p4 = scmp.lt.s32.totalorder %s41_s28, %s41_s28 }
   0xf   :  { %p999_p3 = scmp.ne.s32.totalorder %s41_s28, %s998_s12  ;;  %p1004_p5 = scmp.lt.s32.totalorder %s998_s12, %s998_s12 }
  0x11   :  { %p1005_p6 = por %p1004_p5, %p1003_p4 }
  0x13   :  { %p1006_p7 = pnand %p1005_p6, %p999_p3 }
  0x15   :  { %1009 = shalt.err (!%p1006_p7)
}
  0x16   :  { %s1153_s19 = smov 128   ;;  %s1154_s20 = smov 8  }
  0x17   :  { %46 = dma.hbm_to_vmem [thread:$0]  %s1400_s1, 512, %s41_s28, [#allocation7], %s1153_s19, %s1153_s19, %s1154_s20  }
  0x18   :  { %s1155_s23 = smov [#allocation9]   ;;  %s1156_s25 = smov [#allocation3]  }
  0x19   :  { %s68_s24 = sshll.u32 %s1155_s23, 4  ;;  %s31_s26 = sshll.u32 %s1156_s25, 4  ;;  %s69_s24 = int_to_ptr.vmem [resolvable:$true] %s68_s24  ;;  %s32_s26 = int_to_ptr.vmem [resolvable:$true] %s31_s26 }
  0x1a   :  { %s1010_s30 = scalar_lea.hbm %s1404_s5, 2048 }
  0x1b   :  { %p1011_p8 = scmp.ne.s32.totalorder %s1404_s5, %s1010_s30  ;;  %p1014_p9 = scmp.lt.u32.totalorder %s1010_s30, %s1404_s5 }
  0x1d   :  { %p1016_p10 = pnand %p1014_p9, %p1011_p8 }
  0x1f   :  { %1019 = shalt.err (!%p1016_p10)
}
  0x20   :  { %s1020_s1 = scalar_lea.vmem %s69_s24, 2048  ;;  %p1025_p12 = scmp.lt.s32.totalorder %s69_s24, %s69_s24 }
  0x21   :  { %p1021_p11 = scmp.ne.s32.totalorder %s69_s24, %s1020_s1  ;;  %p1026_p13 = scmp.lt.s32.totalorder %s1020_s1, %s1020_s1 }
  0x23   :  { %p1027_p0 = por %p1026_p13, %p1025_p12 }
  0x25   :  { %p1028_p1 = pnand %p1027_p0, %p1021_p11 }
  0x27   :  { %1031 = shalt.err (!%p1028_p1)
}
  0x28   :  { %74 = dma.hbm_to_vmem [thread:$0]  %s1404_s5, 2048, %s69_s24, [#allocation10], %s1153_s19, %s1153_s19, %s1154_s20  }
  0x29   :  { %s1032_s22 = scalar_lea.hbm %s1399_s0, 128 }
  0x2a   :  { %p1033_p2 = scmp.ne.s32.totalorder %s1399_s0, %s1032_s22  ;;  %p1036_p3 = scmp.lt.u32.totalorder %s1032_s22, %s1399_s0 }
  0x2c   :  { %p1038_p4 = pnand %p1036_p3, %p1033_p2 }
  0x2e   :  { %1041 = shalt.err (!%p1038_p4)
}
  0x2f   :  { %s1042_s30 = scalar_lea.vmem %s32_s26, 128  ;;  %p1047_p6 = scmp.lt.s32.totalorder %s32_s26, %s32_s26 }
  0x30   :  { %p1043_p5 = scmp.ne.s32.totalorder %s32_s26, %s1042_s30  ;;  %p1048_p7 = scmp.lt.s32.totalorder %s1042_s30, %s1042_s30 }
  0x32   :  { %p1049_p8 = por %p1048_p7, %p1047_p6 }
  0x34   :  { %p1050_p9 = pnand %p1049_p8, %p1043_p5 }
  0x36   :  { %1053 = shalt.err (!%p1050_p9)
}
  0x37   :  { %34 = dma.hbm_to_vmem [thread:$0]  %s1399_s0, 128, %s32_s26, [#allocation4]  }
  0x38   :  { %s1157_s14 = smov [#allocation8]   ;;  %s1158_s16 = smov [#allocation11]  }
  0x39   :  { %s54_s15 = sshll.u32 %s1157_s14, 4  ;;  %s82_s17 = sshll.u32 %s1158_s16, 4  ;;  %s55_s15 = int_to_ptr.vmem [resolvable:$true] %s54_s15  ;;  %s83_s17 = int_to_ptr.vmem [resolvable:$true] %s82_s17 }
  0x3a   :  { %s1054_s18 = scalar_lea.hbm %s1402_s3, 2048 }
  0x3b   :  { %p1055_p10 = scmp.ne.s32.totalorder %s1402_s3, %s1054_s18  ;;  %p1058_p11 = scmp.lt.u32.totalorder %s1054_s18, %s1402_s3 }
  0x3d   :  { %p1060_p12 = pnand %p1058_p11, %p1055_p10 }
  0x3f   :  { %1063 = shalt.err (!%p1060_p12)
}
  0x40   :  { %s1064_s0 = scalar_lea.vmem %s55_s15, 2048  ;;  %p1069_p0 = scmp.lt.s32.totalorder %s55_s15, %s55_s15 }
  0x41   :  { %p1065_p13 = scmp.ne.s32.totalorder %s55_s15, %s1064_s0  ;;  %p1070_p1 = scmp.lt.s32.totalorder %s1064_s0, %s1064_s0 }
  0x43   :  { %p1071_p2 = por %p1070_p1, %p1069_p0 }
  0x45   :  { %p1072_p3 = pnand %p1071_p2, %p1065_p13 }
  0x47   :  { %1075 = shalt.err (!%p1072_p3)
}
  0x48   :  { %60 = dma.hbm_to_vmem [thread:$0]  %s1402_s3, 2048, %s55_s15, [#allocation7], %s1153_s19, %s1153_s19, %s1154_s20  }
  0x49   :  { %s1076_s30 = scalar_lea.hbm %s1406_s7, 2048 }
  0x4a   :  { %p1077_p4 = scmp.ne.s32.totalorder %s1406_s7, %s1076_s30  ;;  %p1080_p5 = scmp.lt.u32.totalorder %s1076_s30, %s1406_s7 }
  0x4c   :  { %p1082_p6 = pnand %p1080_p5, %p1077_p4 }
  0x4e   :  { %1085 = shalt.err (!%p1082_p6)
}
  0x4f   :  { %s1086_s1 = scalar_lea.vmem %s83_s17, 2048  ;;  %p1091_p8 = scmp.lt.s32.totalorder %s83_s17, %s83_s17 }
  0x50   :  { %p1087_p7 = scmp.ne.s32.totalorder %s83_s17, %s1086_s1  ;;  %p1092_p9 = scmp.lt.s32.totalorder %s1086_s1, %s1086_s1 }
  0x52   :  { %p1093_p10 = por %p1092_p9, %p1091_p8 }
  0x54   :  { %p1094_p11 = pnand %p1093_p10, %p1087_p7 }
  0x56   :  { %1097 = shalt.err (!%p1094_p11)
}
  0x57   :  { %88 = dma.hbm_to_vmem [thread:$0]  %s1406_s7, 2048, %s83_s17, [#allocation10], %s1153_s19, %s1153_s19, %s1154_s20  }
  0x58   :  { %s1159_s28 = smov [#allocation12]   ;;  %s1098_s22 = scalar_lea.hbm %s1408_s9, 2048 }
  0x59   :  { %s96_s18 = sshll.u32 %s1159_s28, 4  ;;  %p1099_p12 = scmp.ne.s32.totalorder %s1408_s9, %s1098_s22  ;;  %s97_s18 = int_to_ptr.vmem [resolvable:$true] %s96_s18 }
  0x5a   :  { %p1102_p13 = scmp.lt.u32.totalorder %s1098_s22, %s1408_s9 }
  0x5c   :  { %p1104_p0 = pnand %p1102_p13, %p1099_p12 }
  0x5e   :  { %1107 = shalt.err (!%p1104_p0)
}
  0x5f   :  { %s1108_s27 = scalar_lea.vmem %s97_s18, 2048  ;;  %p1113_p2 = scmp.lt.s32.totalorder %s97_s18, %s97_s18 }
  0x60   :  { %p1109_p1 = scmp.ne.s32.totalorder %s97_s18, %s1108_s27  ;;  %p1114_p3 = scmp.lt.s32.totalorder %s1108_s27, %s1108_s27 }
  0x62   :  { %p1115_p4 = por %p1114_p3, %p1113_p2 }
  0x64   :  { %p1116_p5 = pnand %p1115_p4, %p1109_p1 }
  0x66   :  { %1119 = shalt.err (!%p1116_p5)
}
  0x67   :  { %102 = dma.hbm_to_vmem [thread:$0]  %s1408_s9, 2048, %s97_s18, [#allocation13], %s1153_s19, %s1153_s19, %s1154_s20  }
  0x68   :  { %1142 = dma.done.wait [#allocation4], 128  }
  0x69   :  { %1143 = vsyncadd [#allocation4], 4294967168 }
  0x6a   :  { %1144 = dma.done.wait [#allocation7], 2560  }
  0x6b   :  { %1145 = vsyncadd [#allocation7], 4294964736 }
  0x6c   :  { %1146 = dma.done.wait [#allocation10], 4096  }
  0x6d   :  { %1147 = vsyncadd [#allocation10], 4294963200 }
  0x6e   :  { %1148 = dma.done.wait [#allocation13], 2048  }
  0x6f   :  { %1149 = vsyncadd [#allocation13], 4294965248  ;;  %v1160_v1 = vmov 0.0|0.0   ;;  %vm1161_vm0 = vmmov 0   ;;  %v1162_v2 = vmov 0.0   ;;  %v128_v3 = vld [vmem:[#allocation6] sm:$0xff] }
  0x70   :  { %869 = vmatprep.subr.bf16.mxu0 %v1160_v1  ;;  %726 = vmatprep.mubr.msk.f32.mxu0 %vm1161_vm0, %v1162_v2  ;;  %v129_v4 = vld [vmem:[#allocation6 + $0x8] sm:$0xff]  ;;  %v130_v5 = vld [vmem:[#allocation6 + $0x10] sm:$0xff]  ;;  %v131_v7 = vld [vmem:[#allocation6 + $0x18] sm:$0xff]  ;;  %vm139_vm1 = vcmask 261120  }
  0x71   :  { %875 = vmatprep.subr.bf16.mxu1 %v1160_v1  ;;  %761 = vmatprep.mubr.msk.f32.mxu1 %vm1161_vm0, %v1162_v2  ;;  %v870_v6 = vpack.c.bf16 %v129_v4, %v128_v3  ;;  %v214_v8 = vld [vmem:[#allocation8] sm:$0xff]  ;;  %v215_v9 = vld [vmem:[#allocation8 + $0x8] sm:$0xff]  ;;  %v216_v10 = vld [vmem:[#allocation8 + $0x10] sm:$0xff]  ;;  %v873_v12 = vpack.c.bf16 %v131_v7, %v130_v5 }
  0x72   :  { %v217_v11 = vld [vmem:[#allocation8 + $0x18] sm:$0xff]  ;;  %v876_v13 = vpack.c.bf16 %v215_v9, %v214_v8  ;;  %v218_v15 = vld [vmem:[#allocation8 + $0x20] sm:$0xff]  ;;  %v219_v16 = vld [vmem:[#allocation8 + $0x28] sm:$0xff]  ;;  %v1163_v8 = vmov 0  }
  0x73   :  { %871 = vmatpush3.bf16.msra.mxu0 %v870_v6  ;;  %v879_v14 = vpack.c.bf16 %v217_v11, %v216_v10  ;;  %v127_v17 = vld [vmem:[#allocation3] sm:$0xff]  ;;  %v882_v18 = vpack.c.bf16 %v219_v16, %v218_v15  ;;  %v220_v19 = vld [vmem:[#allocation8 + $0x30] sm:$0xff]  ;;  %v222_v22 = vld [vmem:[#allocation8 + $0x40] sm:$0xff]  ;;  %984 = vset.pattern.permute.xlu1 %v1163_v8 }
  0x74   :  { %872 = vmatprep.subr.bf16.mxu0 %v1160_v1  ;;  %877 = vmatpush3.bf16.msra.mxu1 %v876_v13  ;;  %v221_v20 = vld [vmem:[#allocation8 + $0x38] sm:$0xff]  ;;  %v223_v23 = vld [vmem:[#allocation8 + $0x48] sm:$0xff]  ;;  %v224_v25 = vld [vmem:[#allocation8 + $0x50] sm:$0xff] }
  0x75   :  { %878 = vmatprep.subr.bf16.mxu1 %v1160_v1  ;;  %v885_v21 = vpack.c.bf16 %v221_v20, %v220_v19  ;;  %v888_v24 = vpack.c.bf16 %v223_v23, %v222_v22  ;;  %v225_v26 = vld [vmem:[#allocation8 + $0x58] sm:$0xff]  ;;  %v226_v28 = vld [vmem:[#allocation8 + $0x60] sm:$0xff]  ;;  %v227_v29 = vld [vmem:[#allocation8 + $0x68] sm:$0xff]  ;;  %985 = vset.pattern.permute.xlu0 %v1163_v8 }
  0x76   :  { %v891_v27 = vpack.c.bf16 %v225_v26, %v224_v25  ;;  %v894_v30 = vpack.c.bf16 %v227_v29, %v226_v28  ;;  %v228_v31 = vld [vmem:[#allocation8 + $0x70] sm:$0xff]  ;;  %v229_v32 = vld [vmem:[#allocation8 + $0x78] sm:$0xff]  ;;  %v308_v34 = vld [vmem:[#allocation9] sm:$0xff] }
  0x77   :  { %874 = vmatpush3.bf16.msra.mxu0 %v873_v12  ;;  %v897_v33 = vpack.c.bf16 %v229_v32, %v228_v31  ;;  %v309_v35 = vld [vmem:[#allocation9 + $0x8] sm:$0xff]  ;;  %v310_v36 = vld [vmem:[#allocation9 + $0x10] sm:$0xff]  ;;  %v311_v38 = vld [vmem:[#allocation9 + $0x18] sm:$0xff] }
  0x78   :  { %899 = vmatprep.subr.bf16.mxu0 %v1160_v1  ;;  %880 = vmatpush3.bf16.msra.mxu1 %v879_v14  ;;  %v900_v37 = vpack.c.bf16 %v309_v35, %v308_v34  ;;  %v903_v39 = vpack.c.bf16 %v311_v38, %v310_v36  ;;  %v312_v40 = vld [vmem:[#allocation9 + $0x20] sm:$0xff]  ;;  %v313_v41 = vld [vmem:[#allocation9 + $0x28] sm:$0xff]  ;;  %v314_v43 = vld [vmem:[#allocation9 + $0x30] sm:$0xff] }
  0x79   :  { %881 = vmatprep.subr.bf16.mxu1 %v1160_v1  ;;  %v906_v42 = vpack.c.bf16 %v313_v41, %v312_v40  ;;  %v315_v44 = vld [vmem:[#allocation9 + $0x38] sm:$0xff]  ;;  %v316_v46 = vld [vmem:[#allocation9 + $0x40] sm:$0xff]  ;;  %v317_v47 = vld [vmem:[#allocation9 + $0x48] sm:$0xff] }
  0x7a   :  { %727 = vmatmul.mubr.msk.f32.vlgmr.msra.gmra.mrb[0].mxu0 %vm139_vm1, %v127_v17  ;;  %v909_v45 = vpack.c.bf16 %v315_v44, %v314_v43  ;;  %v912_v48 = vpack.c.bf16 %v317_v47, %v316_v46  ;;  %v318_v49 = vld [vmem:[#allocation9 + $0x50] sm:$0xff]  ;;  %v319_v50 = vld [vmem:[#allocation9 + $0x58] sm:$0xff]  ;;  %v320_v52 = vld [vmem:[#allocation9 + $0x60] sm:$0xff] }
  0x7b   :  { %796 = vmatprep.mubr.msk.f32.mxu0 %vm1161_vm0, %v1162_v2  ;;  %901 = vmatpush3.bf16.msra.mxu0 %v900_v37  ;;  %v915_v51 = vpack.c.bf16 %v319_v50, %v318_v49  ;;  %v321_v53 = vld [vmem:[#allocation9 + $0x68] sm:$0xff]  ;;  %v637_v55 = vld [vmem:[%s1401_s2] ss:$0 sm:$0xff]  ;;  %v323_v61 = vld [vmem:[#allocation9 + $0x78] sm:$0xff] }
  0x7c   :  { %883 = vmatpush3.bf16.msra.mxu1 %v882_v18  ;;  %902 = vmatprep.subr.bf16.mxu0 %v1160_v1  ;;  %v918_v54 = vpack.c.bf16 %v321_v53, %v320_v52  ;;  %v322_v60 = vld [vmem:[#allocation9 + $0x70] sm:$0xff]  ;;  %v402_v9 = vld [vmem:[#allocation11] sm:$0xff]  ;;  %v403_v10 = vld [vmem:[#allocation11 + $0x8] sm:$0xff] }
  0x7d   :  { %884 = vmatprep.subr.bf16.mxu1 %v1160_v1  ;;  %v921_v62 = vpack.c.bf16 %v323_v61, %v322_v60  ;;  %v639_v63 = vld [vmem:[%s1403_s4] ss:$0 sm:$0xff]  ;;  %v924_v12 = vpack.c.bf16 %v403_v10, %v402_v9  ;;  %v405_v13 = vld [vmem:[#allocation11 + $0x18] sm:$0xff]  ;;  %v406_v15 = vld [vmem:[#allocation11 + $0x20] sm:$0xff] }
  0x7e   :  { %v643_v5 = vld [vmem:[%s1410_s11] ss:$0 sm:$0xff]  ;;  %v407_v16 = vld [vmem:[#allocation11 + $0x28] sm:$0xff]  ;;  %v409_v18 = vld [vmem:[#allocation11 + $0x38] sm:$0xff] }
  0x7f   :  { %904 = vmatpush3.bf16.msra.mxu0 %v903_v39  ;;  %v404_v11 = vld [vmem:[#allocation11 + $0x10] sm:$0xff]  ;;  %v930_v17 = vpack.c.bf16 %v407_v16, %v406_v15  ;;  %v410_v20 = vld [vmem:[#allocation11 + $0x40] sm:$0xff]  ;;  %v497_v36 = vld [vmem:[#allocation12 + $0x8] sm:$0xff] }
  0x80   :  { %886 = vmatpush3.bf16.msra.mxu1 %v885_v21  ;;  %905 = vmatprep.subr.bf16.mxu0 %v1160_v1  ;;  %v927_v14 = vpack.c.bf16 %v405_v13, %v404_v11  ;;  %v411_v21 = vld [vmem:[#allocation11 + $0x48] sm:$0xff]  ;;  %v412_v23 = vld [vmem:[#allocation11 + $0x50] sm:$0xff]  ;;  %v414_v26 = vld [vmem:[#allocation11 + $0x60] sm:$0xff] }
  0x81   :  { %887 = vmatprep.subr.bf16.mxu1 %v1160_v1  ;;  %v936_v22 = vpack.c.bf16 %v411_v21, %v410_v20  ;;  %v416_v29 = vld [vmem:[#allocation11 + $0x70] sm:$0xff]  ;;  %v496_v35 = vld [vmem:[#allocation12] sm:$0xff]  ;;  %v499_v39 = vld [vmem:[#allocation12 + $0x18] sm:$0xff] }
  0x82   :  { %v644_v32 = vld [vmem:[#allocation2] ss:$0 sm:$0xff]  ;;  %v948_v38 = vpack.c.bf16 %v497_v36, %v496_v35  ;;  %v500_v41 = vld [vmem:[#allocation12 + $0x20] sm:$0xff] }
  0x83   :  { %907 = vmatpush3.bf16.msra.mxu0 %v906_v42  ;;  %v498_v37 = vld [vmem:[#allocation12 + $0x10] sm:$0xff]  ;;  %v501_v42 = vld [vmem:[#allocation12 + $0x28] sm:$0xff]  ;;  %v504_v47 = vld [vmem:[#allocation12 + $0x40] sm:$0xff] }
  0x84   :  { %889 = vmatpush3.bf16.msra.mxu1 %v888_v24  ;;  %908 = vmatprep.subr.bf16.mxu0 %v1160_v1  ;;  %v413_v24 = vld [vmem:[#allocation11 + $0x58] sm:$0xff]  ;;  %v951_v40 = vpack.c.bf16 %v499_v39, %v498_v37  ;;  %v954_v43 = vpack.c.bf16 %v501_v42, %v500_v41  ;;  %v502_v44 = vld [vmem:[#allocation12 + $0x30] sm:$0xff]  ;;  %v508_v53 = vld [vmem:[#allocation12 + $0x60] sm:$0xff] }
  0x85   :  { %890 = vmatprep.subr.bf16.mxu1 %v1160_v1  ;;  %v939_v25 = vpack.c.bf16 %v413_v24, %v412_v23  ;;  %v506_v50 = vld [vmem:[#allocation12 + $0x50] sm:$0xff] }
  0x86   :  { %v510_v61 = vld [vmem:[#allocation12 + $0x70] sm:$0xff] }
  0x87   :  { %910 = vmatpush3.bf16.msra.mxu0 %v909_v45  ;;  %v503_v45 = vld [vmem:[#allocation12 + $0x38] sm:$0xff] }
  0x88   :  { %892 = vmatpush3.bf16.msra.mxu1 %v891_v27  ;;  %911 = vmatprep.subr.bf16.mxu0 %v1160_v1  ;;  %v415_v27 = vld [vmem:[#allocation11 + $0x68] sm:$0xff]  ;;  %v957_v46 = vpack.c.bf16 %v503_v45, %v502_v44 }
  0x89   :  { %893 = vmatprep.subr.bf16.mxu1 %v1160_v1  ;;  %v942_v28 = vpack.c.bf16 %v415_v27, %v414_v26 }
  0x8b   :  { %913 = vmatpush3.bf16.msra.mxu0 %v912_v48  ;;  %v505_v48 = vld [vmem:[#allocation12 + $0x48] sm:$0xff] }
  0x8c   :  { %895 = vmatpush3.bf16.msra.mxu1 %v894_v30  ;;  %914 = vmatprep.subr.bf16.mxu0 %v1160_v1  ;;  %v417_v30 = vld [vmem:[#allocation11 + $0x78] sm:$0xff]  ;;  %v960_v49 = vpack.c.bf16 %v505_v48, %v504_v47 }
  0x8d   :  { %896 = vmatprep.subr.bf16.mxu1 %v1160_v1  ;;  %v945_v31 = vpack.c.bf16 %v417_v30, %v416_v29 }
  0x8f   :  { %916 = vmatpush3.bf16.msra.mxu0 %v915_v51  ;;  %v507_v51 = vld [vmem:[#allocation12 + $0x58] sm:$0xff] }
  0x90   :  { %898 = vmatpush3.bf16.msra.mxu1 %v897_v33  ;;  %917 = vmatprep.subr.bf16.mxu0 %v1160_v1  ;;  %v963_v52 = vpack.c.bf16 %v507_v51, %v506_v50 }
  0x91   :  { %923 = vmatprep.subr.bf16.mxu1 %v1160_v1 }
  0x93   :  { %919 = vmatpush3.bf16.msra.mxu0 %v918_v54  ;;  %v509_v54 = vld [vmem:[#allocation12 + $0x68] sm:$0xff] }
  0x94   :  { %920 = vmatprep.subr.bf16.mxu0 %v1160_v1 }
  0x97   :  { %922 = vmatpush3.bf16.msra.mxu0 %v921_v62  ;;  %v511_v62 = vld [vmem:[#allocation12 + $0x78] sm:$0xff] }
  0x98   :  { %947 = vmatprep.subr.bf16.mxu0 %v1160_v1 }
 0x14d   :  { %v209_v56 = vpop.f32.mrb[0].mxu0 }
 0x14e   :  { %v210_v57 = vadd.f32 %v637_v55, %v209_v56  ;;  %v728_v58 = vpop.f32.mrb[1].mxu0  ;;  %v966_v55 = vpack.c.bf16 %v509_v54, %v508_v53  ;;  %v640_v56 = vld [vmem:[%s1405_s6] ss:$0 sm:$0xff] }
 0x150   :  { %v213_v59 = vmax.f32 %v210_v57, 0.0 }
 0x152   :  { %762 = vmatmul.mubr.f32.vlgmr.msra.gmra.mrb[0].mxu1 %v213_v59 }
 0x153   :  { %831 = vmatprep.mubr.msk.f32.mxu1 %vm1161_vm0, %v1162_v2  ;;  %925 = vmatpush3.bf16.msra.mxu1 %v924_v12 }
 0x154   :  { %926 = vmatprep.subr.bf16.mxu1 %v1160_v1 }
 0x157   :  { %928 = vmatpush3.bf16.msra.mxu1 %v927_v14 }
 0x158   :  { %929 = vmatprep.subr.bf16.mxu1 %v1160_v1 }
 0x15b   :  { %931 = vmatpush3.bf16.msra.mxu1 %v930_v17 }
 0x15c   :  { %932 = vmatprep.subr.bf16.mxu1 %v1160_v1 }
 0x225   :  { %v303_v0 = vpop.f32.mrb[0].mxu1 }
 0x226   :  { %v304_v3 = vadd.f32 %v639_v63, %v303_v0  ;;  %v763_v4 = vpop.f32.mrb[1].mxu1  ;;  %v969_v63 = vpack.c.bf16 %v511_v62, %v510_v61  ;;  %v641_v0 = vld [vmem:[%s1407_s8] ss:$0 sm:$0xff]  ;;  %s1164_s8 = smov [#allocation14]  }
 0x227   :  { %s625_s16 = sshll.u32 %s1164_s8, 4  ;;  %s626_s16 = int_to_ptr.vmem [resolvable:$true] %s625_s16 }
 0x228   :  { %v307_v6 = vmax.f32 %v304_v3, 0.0  ;;  %s1120_s1 = scalar_lea.vmem %s626_s16, 128  ;;  %p1125_p7 = scmp.lt.s32.totalorder %s626_s16, %s626_s16 }
 0x229   :  { %p1121_p6 = scmp.ne.s32.totalorder %s626_s16, %s1120_s1  ;;  %p1126_p8 = scmp.lt.s32.totalorder %s1120_s1, %s1120_s1 }
 0x22a   :  { %797 = vmatmul.mubr.f32.vlgmr.msra.gmra.mrb[2].mxu0 %v307_v6  ;;  %v596_v7 = vmul.f32 %v643_v5, %v307_v6  ;;  %v642_v6 = vld [vmem:[%s1409_s10] ss:$0 sm:$0xff] }
 0x22b   :  { %866 = vmatprep.mubr.msk.f32.mxu0 %vm1161_vm0, %v1162_v2  ;;  %v408_v2 = vld [vmem:[#allocation11 + $0x30] sm:$0xff]  ;;  %949 = vmatpush3.bf16.msra.mxu0 %v948_v38  ;;  %p1127_p9 = por %p1126_p8, %p1125_p7 }
 0x22c   :  { %597 = vadd.xlane.f32.xlu0 %v596_v7  ;;  %v933_v19 = vpack.c.bf16 %v409_v18, %v408_v2  ;;  %950 = vmatprep.subr.bf16.mxu0 %v1160_v1 }
 0x22d   :  { %p1128_p10 = pnand %p1127_p9, %p1121_p6 }
 0x22e   :  { %934 = vmatpush3.bf16.msra.mxu1 %v933_v19 }
 0x22f   :  { %935 = vmatprep.subr.bf16.mxu1 %v1160_v1  ;;  %952 = vmatpush3.bf16.msra.mxu0 %v951_v40 }
 0x230   :  { %953 = vmatprep.subr.bf16.mxu0 %v1160_v1 }
 0x232   :  { %937 = vmatpush3.bf16.msra.mxu1 %v936_v22 }
 0x233   :  { %938 = vmatprep.subr.bf16.mxu1 %v1160_v1  ;;  %955 = vmatpush3.bf16.msra.mxu0 %v954_v43 }
 0x234   :  { %956 = vmatprep.subr.bf16.mxu0 %v1160_v1 }
 0x236   :  { %940 = vmatpush3.bf16.msra.mxu1 %v939_v25 }
 0x237   :  { %941 = vmatprep.subr.bf16.mxu1 %v1160_v1  ;;  %958 = vmatpush3.bf16.msra.mxu0 %v957_v46 }
 0x238   :  { %959 = vmatprep.subr.bf16.mxu0 %v1160_v1 }
 0x23a   :  { %943 = vmatpush3.bf16.msra.mxu1 %v942_v28 }
 0x23b   :  { %944 = vmatprep.subr.bf16.mxu1 %v1160_v1  ;;  %961 = vmatpush3.bf16.msra.mxu0 %v960_v49 }
 0x23c   :  { %962 = vmatprep.subr.bf16.mxu0 %v1160_v1 }
 0x23e   :  { %946 = vmatpush3.bf16.msra.mxu1 %v945_v31 }
 0x23f   :  { %964 = vmatpush3.bf16.msra.mxu0 %v963_v52 }
 0x240   :  { %965 = vmatprep.subr.bf16.mxu0 %v1160_v1 }
 0x243   :  { %967 = vmatpush3.bf16.msra.mxu0 %v966_v55 }
 0x244   :  { %968 = vmatprep.subr.bf16.mxu0 %v1160_v1 }
 0x247   :  { %970 = vmatpush3.bf16.msra.mxu0 %v969_v63 }
 0x2b9   :  { %v598_v33 = vpop.xlane.xlu0 %597 }
 0x2ba   :  { %v606_v34 = vadd.f32 %v644_v32, %v598_v33 }
 0x2bc   :  { %612 = vperm.xlu1 %984, %v606_v34  }
 0x2fd   :  { %v397_v57 = vpop.f32.mrb[2].mxu0 }
 0x2fe   :  { %v398_v58 = vadd.f32 %v640_v56, %v397_v57  ;;  %v798_v59 = vpop.f32.mrb[3].mxu0 }
 0x300   :  { %v401_v60 = vmax.f32 %v398_v58, 0.0 }
 0x302   :  { %832 = vmatmul.mubr.f32.vlgmr.msra.gmra.mrb[2].mxu1 %v401_v60 }
 0x33b   :  { %v613_v10 = vpop.permute.xlu1 %612 }
 0x3d5   :  { %v491_v3 = vpop.f32.mrb[2].mxu1 }
 0x3d6   :  { %v492_v4 = vadd.f32 %v641_v0, %v491_v3  ;;  %v833_v1 = vpop.f32.mrb[3].mxu1 }
 0x3d8   :  { %v495_v5 = vmax.f32 %v492_v4, 0.0 }
 0x3da   :  { %867 = vmatmul.mubr.f32.vlgmr.msra.gmra.mrb[4].mxu0 %v495_v5 }
 0x4ad   :  { %v585_v7 = vpop.f32.mrb[4].mxu0 }
 0x4ae   :  { %v586_v8 = vadd.f32 %v642_v6, %v585_v7  ;;  %v868_v9 = vpop.f32.mrb[5].mxu0 }
 0x4b0   :  { %607 = vadd.xlane.f32.xlu0 %v586_v8  ;;  %v615_v12 = vadd.f32 %v613_v10, %v586_v8 }
 0x53d   :  { %v608_v11 = vpop.xlane.xlu0 %607 }
 0x53e   :  { %v609_v13 = vmul.f32 0.125, %v608_v11 }
 0x540   :  { %v616_v14 = vsub.f32 %v615_v12, %v609_v13 }
 0x542   :  { %986 = vtanh.f32 %v616_v14 }
 0x54c   :  { %v987_v15 = vpop.eup %986 }
 0x54d   :  { %618 = vst [vmem:[#allocation14] sm:$0xff] %v987_v15 }
 0x54e   :  { %1131 = shalt.err (!%p1128_p10)
}
 0x54f   :  { %s1132_s15 = scalar_lea.hbm %s1412_s13, 128 }
 0x550   :  { %p1133_p11 = scmp.ne.s32.totalorder %s1412_s13, %s1132_s15  ;;  %p1136_p12 = scmp.lt.u32.totalorder %s1132_s15, %s1412_s13 }
 0x552   :  { %p1138_p13 = pnand %p1136_p12, %p1133_p11 }
 0x554   :  { %1141 = shalt.err (!%p1138_p13)
}
 0x555   :  { %628 = dma.vmem_to_hbm [thread:$0]  %s626_s16, 128, %s1412_s13, [#allocation5]  }
 0x556   :  { %1150 = dma.done.wait [#allocation5], 128  }
 0x557   :  { %1151 = vsyncadd [#allocation5], 4294967168 }
 0x558   :  { %632 = vsyncpa [#allocation4], 1 }
 0x559   :  { %633 = vsyncpa [#allocation7], 1 }
 0x55a   :  { %634 = vsyncpa [#allocation10], 1 }
 0x55b   :  { %635 = vsyncpa [#allocation13], 1 }
 0x55c   :  { %636 = vsyncpa [#allocation5], 1 }

</bundles_post_ra>
